<compile_context>
chip_gen: v7x
topology: tpu7x:2x2x1
jax: 0.10.0
libtpu: 0.0.40
codegen_flags: <defaults>
</compile_context>

<pallas_src>
import functools

import jax
import jax.numpy as jnp
from jax.experimental import pallas as pl
from jax.experimental.pallas import tpu as pltpu

LANE = 128


def _round_up(x, m):
    return (x + m - 1) // m * m


# --------------------------------------------------------------------------
# Fused 2-layer SAGE kernel
# --------------------------------------------------------------------------
def _fused_gnn_kernel(a_ref, x_ref, w1l_ref, w1r_ref, b1_ref,
                      w2l_ref, w2r_ref, b2_ref, o_ref,
                      h_ref, hw2l_ref, *, tile_m):
    phase = pl.program_id(0)
    i = pl.program_id(1)
    row = pl.multiple_of(i * tile_m, tile_m)

    @pl.when(phase == 0)
    def _layer1():
        # mean aggregation for this dst tile: bf16 MXU, f32 accumulate
        agg = jnp.dot(a_ref[...], x_ref[...], preferred_element_type=jnp.float32)
        x_tile = x_ref[pl.ds(row, tile_m), :]          # root term, sliced from resident X
        h = jnp.dot(agg.astype(jnp.bfloat16), w1l_ref[...],
                    preferred_element_type=jnp.float32)
        h = h + jnp.dot(x_tile, w1r_ref[...], preferred_element_type=jnp.float32)
        h = jnp.maximum(h + b1_ref[...], 0.0)          # f32 epilogue (v5e-safe)
        h_bf = h.astype(jnp.bfloat16)
        h_ref[pl.ds(row, tile_m), :] = h_bf
        # Layer-2 left projection folded into phase 0 while the h tile is hot.
        hw2l_ref[pl.ds(row, tile_m), :] = jnp.dot(
            h_bf, w2l_ref[...], preferred_element_type=jnp.float32
        ).astype(jnp.bfloat16)

    @pl.when(phase == 1)
    def _layer2():
        out = jnp.dot(a_ref[...], hw2l_ref[...], preferred_element_type=jnp.float32)
        out = out + jnp.dot(h_ref[pl.ds(row, tile_m), :], w2r_ref[...],
                            preferred_element_type=jnp.float32)
        o_ref[...] = (out + b2_ref[...]).astype(o_ref.dtype)


# --------------------------------------------------------------------------
# Glue: dense mean-normalized adjacency from edge_index (plain JAX)
# --------------------------------------------------------------------------
def build_mean_adjacency(edge_index, num_nodes_pad):
    """edge_index: [2, E] int32, row 0 = src, row 1 = dst. Returns [Np, Np] f32."""
    src, dst = edge_index[0], edge_index[1]
    a = jnp.zeros((num_nodes_pad, num_nodes_pad), jnp.float32).at[dst, src].add(1.0)
    deg = a.sum(axis=1, keepdims=True)
    return a / jnp.maximum(deg, 1.0)  # nodes with no in-edges aggregate to 0


# --------------------------------------------------------------------------
# GNNEncoder forward
# --------------------------------------------------------------------------
def gnn_encoder_forward(x, edge_index, params, *, tile_m=16):
    n, f_in = x.shape
    hid = params["w1_l"].shape[1]
    out_c = params["w2_l"].shape[1]

    n_pad = _round_up(n, tile_m)
    hid_pad = _round_up(hid, LANE)       # lane-dense h / h@W2_l scratch stores
    out_pad = _round_up(out_c, LANE)     # lane-dense output stores
    n_tiles = n_pad // tile_m

    # bf16 MXU inputs (f32 accumulation inside the kernel)
    a_norm = build_mean_adjacency(edge_index, n_pad).astype(jnp.bfloat16)
    x_p = jnp.zeros((n_pad, f_in), jnp.bfloat16).at[:n].set(x.astype(jnp.bfloat16))

    def _pad_cols(w, cols):
        return jnp.zeros((w.shape[0], cols), jnp.bfloat16).at[:, : w.shape[1]].set(
            w.astype(jnp.bfloat16))

    w1l = _pad_cols(params["w1_l"], hid_pad)
    w1r = _pad_cols(params["w1_r"], hid_pad)
    b1 = jnp.zeros((1, hid_pad), jnp.float32).at[:, :hid].set(
        params["b1_l"].reshape(1, hid).astype(jnp.float32))
    w2l = jnp.zeros((hid_pad, out_pad), jnp.bfloat16).at[:hid, :out_c].set(
        params["w2_l"].astype(jnp.bfloat16))
    w2r = jnp.zeros((hid_pad, out_pad), jnp.bfloat16).at[:hid, :out_c].set(
        params["w2_r"].astype(jnp.bfloat16))
    b2 = jnp.zeros((1, out_pad), jnp.float32).at[:, :out_c].set(
        params["b2_l"].reshape(1, out_c).astype(jnp.float32))

    kernel = functools.partial(_fused_gnn_kernel, tile_m=tile_m)
    out = pl.pallas_call(
        kernel,
        out_shape=jax.ShapeDtypeStruct((n_pad, out_pad), jnp.float32),
        grid=(2, n_tiles),  # (phase, dst tile); phase-major
        in_specs=[
            pl.BlockSpec((tile_m, n_pad), lambda p, i: (i, 0)),      # A tile (streamed)
            pl.BlockSpec((n_pad, f_in), lambda p, i: (0, 0)),        # X full (resident)
            pl.BlockSpec((f_in, hid_pad), lambda p, i: (0, 0)),      # W1_l
            pl.BlockSpec((f_in, hid_pad), lambda p, i: (0, 0)),      # W1_r
            pl.BlockSpec((1, hid_pad), lambda p, i: (0, 0)),         # b1
            pl.BlockSpec((hid_pad, out_pad), lambda p, i: (0, 0)),   # W2_l (padded)
            pl.BlockSpec((hid_pad, out_pad), lambda p, i: (0, 0)),   # W2_r (padded)
            pl.BlockSpec((1, out_pad), lambda p, i: (0, 0)),         # b2 (padded)
        ],
        # phase 0 keeps the output block index pinned at 0 (no wasted writebacks);
        # phase 1 writes each tile exactly once.
        out_specs=pl.BlockSpec((tile_m, out_pad), lambda p, i: (i * p, 0)),
        scratch_shapes=[
            pltpu.VMEM((n_pad, hid_pad), jnp.bfloat16),   # h (layer-1 activations)
            pltpu.VMEM((n_pad, out_pad), jnp.bfloat16),   # h @ W2_l
        ],
        compiler_params=pltpu.CompilerParams(
            # cross-phase dependency through the h scratch => sequential grid
            dimension_semantics=("arbitrary", "arbitrary"),
        ),
    )(a_norm, x_p, w1l, w1r, b1, w2l, w2r, b2)
    return out[:n, :out_c]


def init_params(key, in_channels, hidden_channels, out_channels):
    ks = jax.random.split(key, 4)
    s1 = 1.0 / jnp.sqrt(jnp.float32(in_channels))
    s2 = 1.0 / jnp.sqrt(jnp.float32(hidden_channels))
    return {
        "w1_l": (jax.random.normal(ks[0], (in_channels, hidden_channels)) * s1).astype(jnp.float32),
        "b1_l": jnp.zeros((1, hidden_channels), jnp.float32),
        "w1_r": (jax.random.normal(ks[1], (in_channels, hidden_channels)) * s1).astype(jnp.float32),
        "w2_l": (jax.random.normal(ks[2], (hidden_channels, out_channels)) * s2).astype(jnp.float32),
        "b2_l": jnp.zeros((1, out_channels), jnp.float32),
        "w2_r": (jax.random.normal(ks[3], (hidden_channels, out_channels)) * s2).astype(jnp.float32),
    }


if __name__ == "__main__":
    key = jax.random.PRNGKey(0)
    k_x, k_e, k_p = jax.random.split(key, 3)

    num_nodes, in_channels, hidden_channels, out_channels, num_edges = 32, 16, 32, 8, 64

    x = jax.random.normal(k_x, (num_nodes, in_channels), jnp.float32)
    edge_index = jax.random.randint(k_e, (2, num_edges), 0, num_nodes, jnp.int32)
    params = init_params(k_p, in_channels, hidden_channels, out_channels)

    fwd = jax.jit(gnn_encoder_forward)
    out = jax.block_until_ready(fwd(x, edge_index, params))
    assert out.shape == (num_nodes, out_channels)

    # pure-JAX reference replicating the kernel's bf16-input / f32-accumulate math
    def _bf(v):
        return v.astype(jnp.bfloat16).astype(jnp.float32)

    tile_m = 16
    n_pad = _round_up(num_nodes, tile_m)
    a = _bf(build_mean_adjacency(edge_index, n_pad))
    xp = _bf(jnp.zeros((n_pad, in_channels), jnp.float32).at[:num_nodes].set(x))
    agg = a @ xp
    h = jnp.maximum(_bf(agg) @ _bf(params["w1_l"]) + xp @ _bf(params["w1_r"])
                    + params["b1_l"], 0.0)
    hb = _bf(h)
    hw2l = _bf(hb @ _bf(params["w2_l"]))
    ref = (a @ hw2l + hb @ _bf(params["w2_r"]) + params["b2_l"])[:num_nodes]

    max_err = float(jnp.max(jnp.abs(out - ref)))
    assert jnp.allclose(out, ref, atol=2e-2, rtol=2e-2), f"max_err={max_err}"

    print("KERNEL_OK")
</pallas_src>

<mosaic_0001>
module attributes {stable_mosaic.version = 11 : i64} {
  func.func private @main(%arg0: i32) attributes {dimension_semantics = [#tpu.dimension_semantics<core_parallel>], iteration_bounds = array<i64: 2>, tpu.core_type = #tpu.core_type<sc_scalar_subcore>, window_params = []} {
    return
  }
}

module attributes {stable_mosaic.version = 11 : i64} {
  func.func private @main(%arg0: i32) attributes {dimension_semantics = [#tpu.dimension_semantics<core_parallel>], iteration_bounds = array<i64: 2>, tpu.core_type = #tpu.core_type<sc_scalar_subcore>, window_params = []} {
    return
  }
}

module attributes {stable_mosaic.version = 11 : i64} {
  func.func @_fused_gnn_kernel(%arg0: i32, %arg1: i32, %arg2: memref<16x32xbf16, #tpu.memory_space<vmem>>, %arg3: memref<32x16xbf16, #tpu.memory_space<vmem>>, %arg4: memref<16x128xbf16, #tpu.memory_space<vmem>>, %arg5: memref<16x128xbf16, #tpu.memory_space<vmem>>, %arg6: memref<1x128xf32, #tpu.memory_space<vmem>>, %arg7: memref<128x128xbf16, #tpu.memory_space<vmem>>, %arg8: memref<128x128xbf16, #tpu.memory_space<vmem>>, %arg9: memref<1x128xf32, #tpu.memory_space<vmem>>, %arg10: memref<16x128xf32, #tpu.memory_space<vmem>>, %arg11: memref<32x128xbf16, #tpu.memory_space<vmem>>, %arg12: memref<32x128xbf16, #tpu.memory_space<vmem>>) attributes {dimension_semantics = [#tpu.dimension_semantics<arbitrary>, #tpu.dimension_semantics<arbitrary>], iteration_bounds = array<i64: 2, 2>, scalar_prefetch = 0 : i64, scratch_operands = 2 : i64, tpu.core_type = #tpu.core_type<tc>, window_params = [{transform_indices = @transform_0, window_bounds = array<i64: 16, 32>}, {pipeline_mode = #tpu.pipeline_mode<synchronous>, transform_indices = @transform_1, window_bounds = array<i64: 32, 16>}, {pipeline_mode = #tpu.pipeline_mode<synchronous>, transform_indices = @transform_2, window_bounds = array<i64: 16, 128>}, {pipeline_mode = #tpu.pipeline_mode<synchronous>, transform_indices = @transform_3, window_bounds = array<i64: 16, 128>}, {pipeline_mode = #tpu.pipeline_mode<synchronous>, transform_indices = @transform_4, window_bounds = array<i64: 1, 128>}, {pipeline_mode = #tpu.pipeline_mode<synchronous>, transform_indices = @transform_5, window_bounds = array<i64: 128, 128>}, {pipeline_mode = #tpu.pipeline_mode<synchronous>, transform_indices = @transform_6, window_bounds = array<i64: 128, 128>}, {pipeline_mode = #tpu.pipeline_mode<synchronous>, transform_indices = @transform_7, window_bounds = array<i64: 1, 128>}, {transform_indices = @transform_8, window_bounds = array<i64: 16, 128>}]} {
    %c16_i32 = arith.constant 16 : i32
    %0 = arith.muli %arg1, %c16_i32 : i32
    %1 = tpu.assume_multiple %0, 16 : i32
    %c0_i32 = arith.constant 0 : i32
    %2 = arith.cmpi eq, %arg0, %c0_i32 : i32
    %3 = arith.extui %2 : i1 to i32
    %c0_i32_0 = arith.constant 0 : i32
    %4 = arith.cmpi ne, %3, %c0_i32_0 : i32
    scf.if %4 {
      %c0 = arith.constant 0 : index
      %c0_2 = arith.constant 0 : index
      %8 = vector.load %arg2[%c0, %c0_2] : memref<16x32xbf16, #tpu.memory_space<vmem>>, vector<16x32xbf16>
      %c0_3 = arith.constant 0 : index
      %c0_4 = arith.constant 0 : index
      %9 = vector.load %arg3[%c0_3, %c0_4] : memref<32x16xbf16, #tpu.memory_space<vmem>>, vector<32x16xbf16>
      %cst = arith.constant dense<0.000000e+00> : vector<16x16xf32>
      %10 = tpu.matmul %8, %9, %cst {dimension_numbers = #tpu.dot_dimension_numbers<[1], [0], [0], [1], [0, 0, 1, 1], [], []>} : vector<16x32xbf16>, vector<32x16xbf16>, vector<16x16xf32> -> vector<16x16xf32>
      %11 = arith.index_cast %1 : i32 to index
      %c0_5 = arith.constant 0 : index
      %12 = vector.load %arg3[%11, %c0_5] : memref<32x16xbf16, #tpu.memory_space<vmem>>, vector<16x16xbf16>
      %13 = arith.truncf %10 : vector<16x16xf32> to vector<16x16xbf16>
      %c0_6 = arith.constant 0 : index
      %c0_7 = arith.constant 0 : index
      %14 = vector.load %arg4[%c0_6, %c0_7] : memref<16x128xbf16, #tpu.memory_space<vmem>>, vector<16x128xbf16>
      %cst_8 = arith.constant dense<0.000000e+00> : vector<16x128xf32>
      %15 = tpu.matmul %13, %14, %cst_8 {dimension_numbers = #tpu.dot_dimension_numbers<[1], [0], [0], [1], [0, 0, 1, 1], [], []>} : vector<16x16xbf16>, vector<16x128xbf16>, vector<16x128xf32> -> vector<16x128xf32>
      %c0_9 = arith.constant 0 : index
      %c0_10 = arith.constant 0 : index
      %16 = vector.load %arg5[%c0_9, %c0_10] : memref<16x128xbf16, #tpu.memory_space<vmem>>, vector<16x128xbf16>
      %cst_11 = arith.constant dense<0.000000e+00> : vector<16x128xf32>
      %17 = tpu.matmul %12, %16, %cst_11 {dimension_numbers = #tpu.dot_dimension_numbers<[1], [0], [0], [1], [0, 0, 1, 1], [], []>} : vector<16x16xbf16>, vector<16x128xbf16>, vector<16x128xf32> -> vector<16x128xf32>
      %18 = arith.addf %15, %17 : vector<16x128xf32>
      %c0_12 = arith.constant 0 : index
      %c0_13 = arith.constant 0 : index
      %19 = vector.load %arg6[%c0_12, %c0_13] : memref<1x128xf32, #tpu.memory_space<vmem>>, vector<1x128xf32>
      %20 = vector.broadcast %19 : vector<1x128xf32> to vector<16x128xf32>
      %21 = arith.addf %18, %20 : vector<16x128xf32>
      %cst_14 = arith.constant 0.000000e+00 : f32
      %22 = vector.broadcast %cst_14 : f32 to vector<16x128xf32>
      %23 = arith.maximumf %21, %22 : vector<16x128xf32>
      %24 = arith.truncf %23 : vector<16x128xf32> to vector<16x128xbf16>
      %25 = arith.index_cast %1 : i32 to index
      %c0_15 = arith.constant 0 : index
      %26 = vector.load %arg11[%25, %c0_15] : memref<32x128xbf16, #tpu.memory_space<vmem>>, vector<16x128xbf16>
      tpu.vector_store %arg11[%25, %c0_15], %24 {strides = array<i32>} : memref<32x128xbf16, #tpu.memory_space<vmem>>, vector<16x128xbf16>,
      %c0_16 = arith.constant 0 : index
      %c0_17 = arith.constant 0 : index
      %27 = vector.load %arg7[%c0_16, %c0_17] : memref<128x128xbf16, #tpu.memory_space<vmem>>, vector<128x128xbf16>
      %cst_18 = arith.constant dense<0.000000e+00> : vector<16x128xf32>
      %28 = tpu.matmul %24, %27, %cst_18 {dimension_numbers = #tpu.dot_dimension_numbers<[1], [0], [0], [1], [0, 0, 1, 1], [], []>} : vector<16x128xbf16>, vector<128x128xbf16>, vector<16x128xf32> -> vector<16x128xf32>
      %29 = arith.truncf %28 : vector<16x128xf32> to vector<16x128xbf16>
      %30 = arith.index_cast %1 : i32 to index
      %c0_19 = arith.constant 0 : index
      %31 = vector.load %arg12[%30, %c0_19] : memref<32x128xbf16, #tpu.memory_space<vmem>>, vector<16x128xbf16>
      tpu.vector_store %arg12[%30, %c0_19], %29 {strides = array<i32>} : memref<32x128xbf16, #tpu.memory_space<vmem>>, vector<16x128xbf16>,
    } else {
    }
    %c1_i32 = arith.constant 1 : i32
    %5 = arith.cmpi eq, %arg0, %c1_i32 : i32
    %6 = arith.extui %5 : i1 to i32
    %c0_i32_1 = arith.constant 0 : i32
    %7 = arith.cmpi ne, %6, %c0_i32_1 : i32
    scf.if %7 {
      %c0 = arith.constant 0 : index
      %c0_2 = arith.constant 0 : index
      %8 = vector.load %arg2[%c0, %c0_2] : memref<16x32xbf16, #tpu.memory_space<vmem>>, vector<16x32xbf16>
      %c0_3 = arith.constant 0 : index
      %c0_4 = arith.constant 0 : index
      %9 = vector.load %arg12[%c0_3, %c0_4] : memref<32x128xbf16, #tpu.memory_space<vmem>>, vector<32x128xbf16>
      %cst = arith.constant dense<0.000000e+00> : vector<16x128xf32>
      %10 = tpu.matmul %8, %9, %cst {dimension_numbers = #tpu.dot_dimension_numbers<[1], [0], [0], [1], [0, 0, 1, 1], [], []>} : vector<16x32xbf16>, vector<32x128xbf16>, vector<16x128xf32> -> vector<16x128xf32>
      %11 = arith.index_cast %1 : i32 to index
      %c0_5 = arith.constant 0 : index
      %12 = vector.load %arg11[%11, %c0_5] : memref<32x128xbf16, #tpu.memory_space<vmem>>, vector<16x128xbf16>
      %c0_6 = arith.constant 0 : index
      %c0_7 = arith.constant 0 : index
      %13 = vector.load %arg8[%c0_6, %c0_7] : memref<128x128xbf16, #tpu.memory_space<vmem>>, vector<128x128xbf16>
      %cst_8 = arith.constant dense<0.000000e+00> : vector<16x128xf32>
      %14 = tpu.matmul %12, %13, %cst_8 {dimension_numbers = #tpu.dot_dimension_numbers<[1], [0], [0], [1], [0, 0, 1, 1], [], []>} : vector<16x128xbf16>, vector<128x128xbf16>, vector<16x128xf32> -> vector<16x128xf32>
      %15 = arith.addf %10, %14 : vector<16x128xf32>
      %c0_9 = arith.constant 0 : index
      %c0_10 = arith.constant 0 : index
      %16 = vector.load %arg9[%c0_9, %c0_10] : memref<1x128xf32, #tpu.memory_space<vmem>>, vector<1x128xf32>
      %17 = vector.broadcast %16 : vector<1x128xf32> to vector<16x128xf32>
      %18 = arith.addf %15, %17 : vector<16x128xf32>
      %c0_11 = arith.constant 0 : index
      %c0_12 = arith.constant 0 : index
      %19 = vector.load %arg10[%c0_11, %c0_12] : memref<16x128xf32, #tpu.memory_space<vmem>>, vector<16x128xf32>
      tpu.vector_store %arg10[%c0_11, %c0_12], %18 {strides = array<i32>} : memref<16x128xf32, #tpu.memory_space<vmem>>, vector<16x128xf32>,
    } else {
    }
    return
  }
  func.func @transform_0(%arg0: i32, %arg1: i32) -> (i32, i32) {
    %c0_i32 = arith.constant 0 : i32
    %c0_i32_0 = arith.constant 0 : i32
    return %arg1, %c0_i32 : i32, i32
  }
  func.func @transform_1(%arg0: i32, %arg1: i32) -> (i32, i32) {
    %c0_i32 = arith.constant 0 : i32
    %c0_i32_0 = arith.constant 0 : i32
    %c0_i32_1 = arith.constant 0 : i32
    return %c0_i32, %c0_i32_0 : i32, i32
  }
  func.func @transform_2(%arg0: i32, %arg1: i32) -> (i32, i32) {
    %c0_i32 = arith.constant 0 : i32
    %c0_i32_0 = arith.constant 0 : i32
    %c0_i32_1 = arith.constant 0 : i32
    return %c0_i32, %c0_i32_0 : i32, i32
  }
  func.func @transform_3(%arg0: i32, %arg1: i32) -> (i32, i32) {
    %c0_i32 = arith.constant 0 : i32
    %c0_i32_0 = arith.constant 0 : i32
    %c0_i32_1 = arith.constant 0 : i32
    return %c0_i32, %c0_i32_0 : i32, i32
  }
  func.func @transform_4(%arg0: i32, %arg1: i32) -> (i32, i32) {
    %c0_i32 = arith.constant 0 : i32
    %c0_i32_0 = arith.constant 0 : i32
    %c0_i32_1 = arith.constant 0 : i32
    return %c0_i32, %c0_i32_0 : i32, i32
  }
  func.func @transform_5(%arg0: i32, %arg1: i32) -> (i32, i32) {
    %c0_i32 = arith.constant 0 : i32
    %c0_i32_0 = arith.constant 0 : i32
    %c0_i32_1 = arith.constant 0 : i32
    return %c0_i32, %c0_i32_0 : i32, i32
  }
  func.func @transform_6(%arg0: i32, %arg1: i32) -> (i32, i32) {
    %c0_i32 = arith.constant 0 : i32
    %c0_i32_0 = arith.constant 0 : i32
    %c0_i32_1 = arith.constant 0 : i32
    return %c0_i32, %c0_i32_0 : i32, i32
  }
  func.func @transform_7(%arg0: i32, %arg1: i32) -> (i32, i32) {
    %c0_i32 = arith.constant 0 : i32
    %c0_i32_0 = arith.constant 0 : i32
    %c0_i32_1 = arith.constant 0 : i32
    return %c0_i32, %c0_i32_0 : i32, i32
  }
  func.func @transform_8(%arg0: i32, %arg1: i32) -> (i32, i32) {
    %0 = arith.muli %arg1, %arg0 : i32
    %c0_i32 = arith.constant 0 : i32
    %c0_i32_0 = arith.constant 0 : i32
    return %0, %c0_i32 : i32, i32
  }
}

</mosaic_0001>

<bundles_post_ra>
// kernel: gnn_encoder_forward.1
= control target key start
LH: loop header
LB: loop body
LE: loop exit
PB: predicated region body
PF: predicated region fallthrough
CT: control target
= control target key end

     0   :  { %s1200_s27 = smov 0   ;;  %s1202_s28 = smov 0   ;;  %s1344_s0 = inlined_call_operand.vmem [shape: bf16[32,32], index: 0, kind: input, shape index: {}]   ;;  %s1345_s1 = inlined_call_operand.vmem [shape: bf16[32,16], index: 1, kind: input, shape index: {}]   ;;  %s1346_s2 = inlined_call_operand.vmem [shape: bf16[16,128], index: 2, kind: input, shape index: {}]   ;;  %s1347_s3 = inlined_call_operand.vmem [shape: bf16[16,128], index: 3, kind: input, shape index: {}]   ;;  %s1348_s4 = inlined_call_operand.vmem [shape: f32[1,128], index: 4, kind: input, shape index: {}]   ;;  %s1349_s5 = inlined_call_operand.vmem [shape: bf16[128,128], index: 5, kind: input, shape index: {}]   ;;  %s1350_s6 = inlined_call_operand.vmem [shape: bf16[128,128], index: 6, kind: input, shape index: {}]   ;;  %s1351_s7 = inlined_call_operand.vmem [shape: f32[1,128], index: 7, kind: input, shape index: {}]   ;;  %s1352_s8 = inlined_call_operand.vmem [shape: f32[32,128], index: 8, kind: output, shape index: {}]  }
   0x1   :  { %s1204_s29 = smov 0   ;;  %s1206_s30 = smov 0  }
   0x2   :  { %s1208_s9 = smov 0  }
   0x3 LB: > { %s27_s10 = sadd.s32 1, %s1141_s29  ;;  %s30_s11 = sadd.s32 1, %s1145_s30  ;;  %s1149_s9 = sphi %s1208_s9, %s18_s9   ;;  %s1145_s30 = sphi %s1206_s30, %s1356_s30   ;;  %s1141_s29 = sphi %s1204_s29, %s1355_s29   ;;  %s1137_s28 = sphi %s1202_s28, %s1354_s28   ;;  %s1133_s27 = sphi %s1200_s27, %s1353_s27  }
   0x4   : > { %p28_p0 = scmp.ge.s32.totalorder %s27_s10, 2  ;;  %p905_p1 = scmp.ge.s32.totalorder %s1149_s9, 1 }
   0x5   : > { %p277_p2 = scmp.lt.s32.totalorder %s1149_s9, 5 }
   0x6   : > { %s1358_s10 = smov (%p28_p0, %s27_s10), 0  ;;  %s1360_s11 = smov (!%p28_p0, %s30_s11), %s1145_s30 }
   0x7   : > { %p278_p3 = pnand %p905_p1, %p277_p2  ;;  %p32_p4 = scmp.ge.s32.totalorder %s1360_s11, 2 }
   0x8   : > { %s906_s12 = sshll.u32 (!%p278_p3), %s1133_s27, 1  ;;  %s318_s13 = smul.u32 (!%p278_p3), %s1133_s27, %s1137_s28 }
   0x9   : > { %s1362_s11 = smov (%p32_p4, %s1360_s11), 0  ;;  %281 = sbr.rel (%p278_p3) target bundleno = 934 (0x3a6), region = 52 }
   0xa   : > { %p313_p5 = scmp.lt.s32.totalorder (!%p278_p3), %s906_s12, 3  ;;  %s1233_s14 = sshll.u32 (!%p278_p3), %s1133_s27, 4 }
   0xb   : > { %s908_s15 = sshll.u32 (!%p278_p3), %s318_s13, 1  ;;  %p911_p7 = scmp.ne.s32.totalorder (!%p278_p3), %s1137_s28, 0 }
   0xc   : > { %p320_p6 = scmp.lt.s32.totalorder (!%p278_p3), %s908_s15, 3 }
  0x10   : > { %s1364_s12 = smov (!%p313_p5, %s906_s12), 3  ;;  %s1366_s15 = smov (!%p320_p6, %s908_s15), 3 }
  0x11   : > { %s907_s16 = sshll.u32 %s1364_s12, 2  ;;  %s909_s20 = sshll.u32 %s1366_s15, 3  ;;  %v1088_v0 = vld [vmem:[%s1345_s1] sm:$0xff] (!%p911_p7)   ;;  %v1151_v1 = vmov (!%p911_p7), 0.0   ;;  %v1089_v2 = vld [vmem:[%s1345_s1 + $0x8] sm:$0xff] (!%p911_p7)   ;;  %vm1152_vm0 = vmmov (!%p911_p7), 0  }
  0x12   : > { %s1238_s19 = scalar_lea.vmem %s1344_s0, %s907_s16  ;;  %s1243_s23 = scalar_lea.vmem %s1352_s8, %s909_s20  ;;  %976 = vmatprep.subr.bf16.mxu1 (!%p911_p7), %v1151_v1  ;;  %996 = vmatprep.subr.bf16.mxu0 (!%p911_p7), %v1151_v1  ;;  %vm355_vm1 = vcmask (!%p911_p7), 261120   ;;  %v1091_v4 = vld [vmem:[%s1347_s3] sm:$0xff] (!%p911_p7)   ;;  %vm422_vm2 = vcmask (!%p911_p7), 130048   ;;  %v1095_v8 = vld [vmem:[%s1349_s5 + $0x8] sm:$0xff] (!%p911_p7)   ;;  %v1096_v9 = vld [vmem:[%s1349_s5 + $0x10] sm:$0xff] (!%p911_p7)  }
  0x13   : > { %331 = sbr.rel (%p911_p7) target bundleno = 681 (0x2a9), region = 56  ;;  %977 = vmatpush3.bf16.msra.mxu1 (!%p911_p7), %v1088_v0  ;;  %980 = vmatprep.mubr.msk.bf16.mxu1 (!%p911_p7), %vm1152_vm0, %v1151_v1  ;;  %s400_s12 = sshra.s32 (!%p911_p7), %s1233_s14, 3  ;;  %v1090_v3 = vld [vmem:[%s1238_s19] sm:$0xff] (!%p911_p7)   ;;  %v1097_v10 = vld [vmem:[%s1349_s5 + $0x18] sm:$0xff] (!%p911_p7)   ;;  %v1099_v21 = vld [vmem:[%s1349_s5 + $0x28] sm:$0xff] (!%p911_p7)  }
  0x14   : > { %978 = vmatprep.subr.bf16.mxu1 (!%p911_p7), %v1151_v1  ;;  %1012 = vmatprep.mubr.msk.bf16.mxu0 (!%p911_p7), %vm1152_vm0, %v1151_v1  ;;  %s916_s13 = sshll.u32 (!%p911_p7), %s400_s12, 2  ;;  %v1093_v6 = vld [vmem:[%s1346_s2] sm:$0xff] (!%p911_p7)   ;;  %v1100_v22 = vld [vmem:[%s1349_s5 + $0x30] sm:$0xff] (!%p911_p7)   ;;  %v1101_v23 = vld [vmem:[%s1349_s5 + $0x38] sm:$0xff] (!%p911_p7)  }
  0x15   : > { %s403_s17 = scalar_lea.vmem (!%p911_p7), %s1345_s1, %s916_s13  ;;  %v1094_v7 = vld [vmem:[%s1349_s5] sm:$0xff] (!%p911_p7)   ;;  %s529_s13 = sshra.s32 (!%p911_p7), %s1233_s14, 4 }
  0x16   : > { %v1092_v5 = vld [vmem:[%s403_s17] sm:$0xff] (!%p911_p7)   ;;  %997 = vmatpush3.bf16.msra.mxu0 (!%p911_p7), %v1094_v7  ;;  %s923_s15 = sshll.u32 (!%p911_p7), %s529_s13, 3 }
  0x17   : > { %979 = vmatpush3.bf16.msra.mxu1 (!%p911_p7), %v1089_v2  ;;  %998 = vmatprep.subr.bf16.mxu0 (!%p911_p7), %v1151_v1  ;;  %v1098_v11 = vld [vmem:[%s1349_s5 + $0x20] sm:$0xff] (!%p911_p7)   ;;  %s532_s16 = scalar_lea.vmem (!%p911_p7), [#allocation2], %s923_s15  ;;  %s641_s17 = scalar_lea.vmem (!%p911_p7), [#allocation3], %s923_s15 }
  0x18   : > { %984 = vmatprep.subr.bf16.mxu1 (!%p911_p7), %v1151_v1  ;;  %v922_v25 = vld [vmem:[%s1348_s4] ss:$0 sm:$0xff] (!%p911_p7) }
  0x1a   : > { %981 = vmatmul.mubr.msk.bf16.vlgmr.msra.gmra.mrb[0].mxu1 %vm355_vm1, %v1090_v3  ;;  %999 = vmatpush3.bf16.msra.mxu0 %v1095_v8 }
  0x1b   : > { %985 = vmatpush3.bf16.msra.mxu1 %v1091_v4  ;;  %986 = vmatprep.mubr.msk.bf16.mxu1 %vm1152_vm0, %v1151_v1 }
  0x1c   : > { %990 = vmatprep.subr.bf16.mxu1 %v1151_v1  ;;  %1000 = vmatprep.subr.bf16.mxu0 %v1151_v1 }
  0x1e   : > { %1001 = vmatpush3.bf16.msra.mxu0 %v1096_v9 }
  0x1f   : > { %1002 = vmatprep.subr.bf16.mxu0 %v1151_v1 }
  0x22   : > { %987 = vmatmul.mubr.msk.bf16.vlgmr.msra.gmra.mrb[4].mxu1 %vm422_vm2, %v1092_v5  ;;  %1003 = vmatpush3.bf16.msra.mxu0 %v1097_v10 }
  0x23   : > { %991 = vmatpush3.bf16.msra.mxu1 %v1093_v6  ;;  %992 = vmatprep.mubr.msk.bf16.mxu1 %vm1152_vm0, %v1151_v1 }
  0x24   : > { %1004 = vmatprep.subr.bf16.mxu0 %v1151_v1 }
  0x26   : > { %1005 = vmatpush3.bf16.msra.mxu0 %v1098_v11 }
  0x27   : > { %1006 = vmatprep.subr.bf16.mxu0 %v1151_v1 }
  0x2a   : > { %1007 = vmatpush3.bf16.msra.mxu0 %v1099_v21 }
  0x2b   : > { %1008 = vmatprep.subr.bf16.mxu0 %v1151_v1 }
  0x2e   : > { %1009 = vmatpush3.bf16.msra.mxu0 %v1100_v22 }
  0x2f   : > { %1010 = vmatprep.subr.bf16.mxu0 %v1151_v1 }
  0x32   : > { %1011 = vmatpush3.bf16.msra.mxu0 %v1101_v23 }
  0xed   : > { %v393_v12 = vpop.f32.mrb[0].mxu1 }
  0xee   : > { %v982_v13 = vpop.f32.mrb[1].mxu1 }
  0xef   : > { %v396_v14 = vpop.f32.mrb[2].mxu1 }
  0xf0   : > { %v406_v15 = vpack.c.bf16 %v396_v14, %v393_v12  ;;  %v983_v16 = vpop.f32.mrb[3].mxu1 }
  0xf2   : > { %993 = vmatmul.mubr.msk.bf16.vlgmr.msra.gmra.mrb[8].mxu1 %vm422_vm2, %v406_v15 }
  0xf5   : > { %v460_v17 = vpop.f32.mrb[4].mxu1 }
  0xf6   : > { %v988_v18 = vpop.f32.mrb[5].mxu1 }
  0xf7   : > { %v463_v19 = vpop.f32.mrb[6].mxu1 }
  0xf8   : > { %v989_v20 = vpop.f32.mrb[7].mxu1 }
 0x1c5   : > { %v510_v24 = vpop.f32.mrb[8].mxu1 }
 0x1c6   : > { %v511_v26 = vadd.f32 %v510_v24, %v460_v17  ;;  %v994_v27 = vpop.f32.mrb[9].mxu1 }
 0x1c7   : > { %v513_v28 = vpop.f32.mrb[10].mxu1 }
 0x1c8   : > { %v524_v29 = vadd.f32 %v922_v25, %v511_v26  ;;  %v514_v30 = vadd.f32 %v513_v28, %v463_v19  ;;  %v995_v31 = vpop.f32.mrb[11].mxu1 }
 0x1ca   : > { %v525_v32 = vadd.f32 %v922_v25, %v514_v30  ;;  %v526_v33 = vmax.f32 %v524_v29, 0.0 }
 0x1cc   : > { %v527_v34 = vmax.f32 %v525_v32, 0.0 }
 0x1ce   : > { %v528_v35 = vpack.c.bf16 %v527_v34, %v526_v33 }
 0x1d0   : > { %1013 = vmatmul.mubr.bf16.vlgmr.msra.gmra.mrb[0].mxu0 %v528_v35  ;;  %533 = vst [vmem:[%s532_s16] sm:$0xff] %v528_v35 }
 0x2a3   : > { %v632_v36 = vpop.f32.mrb[0].mxu0 }
 0x2a4   : > { %v1014_v37 = vpop.f32.mrb[1].mxu0 }
 0x2a5   : > { %v635_v38 = vpop.f32.mrb[2].mxu0 }
 0x2a6   : > { %v639_v39 = vpack.c.bf16 %v635_v38, %v632_v36  ;;  %v1015_v40 = vpop.f32.mrb[3].mxu0 }
 0x2a8   : > { %642 = vst [vmem:[%s641_s17] sm:$0xff] %v639_v39 }
 0x2a9 PF: > { %p933_p8 = scmp.ne.s32.totalorder %s1137_s28, 1 }
 0x2aa   : > { %v1102_v41 = vld [vmem:[%s1350_s6] sm:$0xff] (!%p933_p8)   ;;  %v1153_v42 = vmov (!%p933_p8), 0.0   ;;  %v1103_v43 = vld [vmem:[%s1350_s6 + $0x8] sm:$0xff] (!%p933_p8)   ;;  %vm1154_vm3 = vmmov (!%p933_p8), 0   ;;  %v1104_v44 = vld [vmem:[%s1350_s6 + $0x10] sm:$0xff] (!%p933_p8)   ;;  %vm766_vm4 = vcmask (!%p933_p8), 261120  }
 0x2ab   : > { %646 = sbr.rel (%p933_p8) target bundleno = 934 (0x3a6), region = 60  ;;  %1016 = vmatprep.subr.bf16.mxu0 (!%p933_p8), %v1153_v42  ;;  %1036 = vmatprep.subr.bf16.mxu1 (!%p933_p8), %v1153_v42  ;;  %v1105_v47 = vld [vmem:[%s1350_s6 + $0x18] sm:$0xff] (!%p933_p8)   ;;  %v1110_v48 = vld [vmem:[%s1238_s19] sm:$0xff] (!%p933_p8)   ;;  %v1107_v50 = vld [vmem:[%s1350_s6 + $0x28] sm:$0xff] (!%p933_p8)   ;;  %s651_s16 = sshra.s32 (!%p933_p8), %s1233_s14, 4 }
 0x2ac   : > { %1017 = vmatpush3.bf16.msra.mxu0 (!%p933_p8), %v1102_v41  ;;  %1040 = vmatprep.mubr.msk.bf16.mxu1 (!%p933_p8), %vm1154_vm3, %v1153_v42  ;;  %v1106_v49 = vld [vmem:[%s1350_s6 + $0x20] sm:$0xff] (!%p933_p8)   ;;  %v1108_v51 = vld [vmem:[%s1350_s6 + $0x30] sm:$0xff] (!%p933_p8)   ;;  %s934_s18 = sshll.u32 (!%p933_p8), %s651_s16, 3  ;;  %v1109_v52 = vld [vmem:[%s1350_s6 + $0x38] sm:$0xff] (!%p933_p8)  }
 0x2ad   : > { %1018 = vmatprep.subr.bf16.mxu0 (!%p933_p8), %v1153_v42  ;;  %1032 = vmatprep.mubr.msk.bf16.mxu0 (!%p933_p8), %vm1154_vm3, %v1153_v42  ;;  %s654_s22 = scalar_lea.vmem (!%p933_p8), [#allocation2], %s934_s18  ;;  %v945_v59 = vld [vmem:[%s1351_s7] ss:$0 sm:$0xff] (!%p933_p8) }
 0x2ae   : > { %v655_v53 = vld [vmem:[%s654_s22] sm:$0xff] (!%p933_p8) }
 0x2af   : > { %v649_v45 = vld [vmem:[#allocation3] sm:$0xff] (!%p933_p8)  ;;  %v650_v46 = vld [vmem:[#allocation3 + $0x8] sm:$0xff] (!%p933_p8) }
 0x2b0   : > { %1019 = vmatpush3.bf16.msra.mxu0 (!%p933_p8), %v1103_v43  ;;  %1037 = vmatpush3.bf16.msra.mxu1 (!%p933_p8), %v649_v45 }
 0x2b1   : > { %1020 = vmatprep.subr.bf16.mxu0 (!%p933_p8), %v1153_v42  ;;  %1038 = vmatprep.subr.bf16.mxu1 (!%p933_p8), %v1153_v42 }
 0x2b4   : > { %1021 = vmatpush3.bf16.msra.mxu0 %v1104_v44  ;;  %1039 = vmatpush3.bf16.msra.mxu1 %v650_v46 }
 0x2b5   : > { %1022 = vmatprep.subr.bf16.mxu0 %v1153_v42 }
 0x2b7   : > { %1041 = vmatmul.mubr.msk.bf16.vlgmr.msra.gmra.mrb[0].mxu1 %vm766_vm4, %v1110_v48 }
 0x2b8   : > { %1023 = vmatpush3.bf16.msra.mxu0 %v1105_v47 }
 0x2b9   : > { %1024 = vmatprep.subr.bf16.mxu0 %v1153_v42 }
 0x2bc   : > { %1025 = vmatpush3.bf16.msra.mxu0 %v1106_v49 }
 0x2bd   : > { %1026 = vmatprep.subr.bf16.mxu0 %v1153_v42 }
 0x2c0   : > { %1027 = vmatpush3.bf16.msra.mxu0 %v1107_v50 }
 0x2c1   : > { %1028 = vmatprep.subr.bf16.mxu0 %v1153_v42 }
 0x2c4   : > { %1029 = vmatpush3.bf16.msra.mxu0 %v1108_v51 }
 0x2c5   : > { %1030 = vmatprep.subr.bf16.mxu0 %v1153_v42 }
 0x2c8   : > { %1031 = vmatpush3.bf16.msra.mxu0 %v1109_v52 }
 0x2cb   : > { %1033 = vmatmul.mubr.bf16.vlgmr.msra.gmra.mrb[0].mxu0 %v655_v53 }
 0x38a   : > { %v804_v54 = vpop.f32.mrb[0].mxu1 }
 0x38b   : > { %v1042_v55 = vpop.f32.mrb[1].mxu1 }
 0x38c   : > { %v807_v56 = vpop.f32.mrb[2].mxu1 }
 0x38d   : > { %v1043_v57 = vpop.f32.mrb[3].mxu1 }
 0x39e   : > { %v754_v58 = vpop.f32.mrb[0].mxu0 }
 0x39f   : > { %v805_v60 = vadd.f32 %v804_v54, %v754_v58  ;;  %v1034_v61 = vpop.f32.mrb[1].mxu0 }
 0x3a0   : > { %v757_v62 = vpop.f32.mrb[2].mxu0 }
 0x3a1   : > { %v818_v63 = vadd.f32 %v945_v59, %v805_v60  ;;  %v808_v0 = vadd.f32 %v807_v56, %v757_v62  ;;  %v1035_v1 = vpop.f32.mrb[3].mxu0 }
 0x3a3   : > { %820 = vst [vmem:[%s1243_s23] sm:$0xff] %v818_v63  ;;  %v819_v2 = vadd.f32 %v945_v59, %v808_v0 }
 0x3a5   : > { %821 = vst [vmem:[%s1243_s23 + $0x8] sm:$0xff] %v819_v2 }
 0x3a6 PF: > { %s18_s9 = sadd.s32 1, %s1149_s9   ;;  %s1353_s27 = smov %s1141_s29 }
 0x3a7   : > { %p15_p9 = scmp.ge.s32.totalorder %s18_s9, 6   ;;  %s1354_s28 = smov %s1145_s30 }
 0x3a8   : > { %s1355_s29 = smov %s1358_s10  ;;  %s1356_s30 = smov %s1362_s11 }
 0x3a9   :  { %17 = sbr.rel (!%p15_p9) target bundleno = 3 (0x3), region = 94 }

</bundles_post_ra>
